<compile_context>
chip_gen: v6e
topology: v6e:2x2x1
jax: 0.10.0
libtpu: 0.0.40
codegen_flags: <defaults>
</compile_context>

<pallas_src>
import functools

import jax
import jax.numpy as jnp
from jax import lax
from jax.experimental import pallas as pl
from jax.experimental.pallas import tpu as pltpu


def _round_up(x, m):
    return ((x + m - 1) // m) * m


def _global_avg_pool_kernel(x_ref, o_ref, acc_ref, *, inv_l, l_rem):
    # x_ref: (TB, TL, TH) tile;  o_ref: (TB, TH);  acc_ref: (TB, TH) f32 scratch.
    l_idx = pl.program_id(2)
    n_l = pl.num_programs(2)

    @pl.when(l_idx == 0)
    def _():
        acc_ref[...] = jnp.zeros_like(acc_ref)

    if l_rem == 0:
        # L divides evenly into TL: no masking anywhere.
        acc_ref[...] += jnp.sum(x_ref[...], axis=1, dtype=jnp.float32)
    else:
        # Only the final L block has an out-of-bounds (garbage) tail; mask it
        # there and only there, so the hot path stays a plain sum.
        @pl.when(l_idx < n_l - 1)
        def _():
            acc_ref[...] += jnp.sum(x_ref[...], axis=1, dtype=jnp.float32)

        @pl.when(l_idx == n_l - 1)
        def _():
            x = x_ref[...]
            mask = lax.broadcasted_iota(jnp.int32, x.shape, 1) < l_rem
            x = jnp.where(mask, x, jnp.zeros_like(x))
            acc_ref[...] += jnp.sum(x, axis=1, dtype=jnp.float32)

    @pl.when(l_idx == n_l - 1)
    def _():
        o_ref[...] = (acc_ref[...] * inv_l).astype(o_ref.dtype)


def global_avg_pool(x, *, tb=8, th=512, tl=256):
    """Mean over axis=1 of a (B, L, H) array, computed in a Pallas TPU kernel."""
    B, L, H = x.shape
    itemsize = jnp.dtype(x.dtype).itemsize
    # Sublane pack for the dtype: 8 for f32, 16 for bf16, 32 for int8/fp8.
    pack = max(8, 32 // itemsize)

    # Full-extent blocks when the dim fits the budget (always layout-legal),
    # otherwise hardware-aligned tiles with cdiv grids (partial blocks are
    # masked on writeback; only the L tail needs in-kernel masking).
    TB = B if B <= tb else _round_up(tb, 8)
    TH = H if H <= th else _round_up(th, 128)
    TL = L if L <= tl else _round_up(tl, pack)

    grid = (pl.cdiv(B, TB), pl.cdiv(H, TH), pl.cdiv(L, TL))
    l_rem = L % TL  # 0 when TL divides L (or TL == L)

    out = pl.pallas_call(
        functools.partial(_global_avg_pool_kernel, inv_l=1.0 / L, l_rem=l_rem),
        out_shape=jax.ShapeDtypeStruct((B, H), x.dtype),
        grid=grid,
        in_specs=[pl.BlockSpec((TB, TL, TH), lambda b, h, l: (b, l, h))],
        out_specs=pl.BlockSpec((TB, TH), lambda b, h, l: (b, h)),
        scratch_shapes=[pltpu.VMEM((TB, TH), jnp.float32)],
        compiler_params=pltpu.CompilerParams(
            dimension_semantics=("parallel", "parallel", "arbitrary"),
            vmem_limit_bytes=32 * 1024 * 1024,
        ),
        cost_estimate=pl.CostEstimate(
            flops=B * L * H,
            transcendentals=0,
            bytes_accessed=B * L * H * itemsize + B * H * itemsize,
        ),
    )(x)

    return out


if __name__ == "__main__":
    key = jax.random.PRNGKey(0)

    # Small shape consistent with the module's forward (B, L, H), mean over L.
    B, L, H = 2, 8, 32
    x = jax.random.normal(key, (B, L, H), dtype=jnp.float32)
    out = jax.block_until_ready(global_avg_pool(x))
    ref = jnp.mean(x, axis=1)
    assert out.shape == (B, H)
    assert jnp.allclose(out, ref, atol=1e-5, rtol=1e-5)

    # Non-multiple dims + small tiles: exercises the multi-step reduction with
    # a masked ragged L tail and an overhanging (masked-writeback) H block.
    key2 = jax.random.PRNGKey(1)
    B2, L2, H2 = 5, 40, 200
    x2 = jax.random.normal(key2, (B2, L2, H2), dtype=jnp.float32)
    out2 = jax.block_until_ready(global_avg_pool(x2, tb=8, th=128, tl=16))
    ref2 = jnp.mean(x2, axis=1)
    assert out2.shape == (B2, H2)
    assert jnp.allclose(out2, ref2, atol=1e-5, rtol=1e-5)

    # bf16 path: exercises the 16-row sublane pack and f32 accumulation.
    key3 = jax.random.PRNGKey(2)
    B3, L3, H3 = 4, 70, 300
    x3 = jax.random.normal(key3, (B3, L3, H3), dtype=jnp.bfloat16)
    out3 = jax.block_until_ready(global_avg_pool(x3, tb=8, th=512, tl=32))
    ref3 = jnp.mean(x3.astype(jnp.float32), axis=1).astype(jnp.bfloat16)
    assert out3.shape == (B3, H3)
    assert jnp.allclose(out3.astype(jnp.float32), ref3.astype(jnp.float32),
                        atol=1e-2, rtol=1e-2)

    print("KERNEL_OK")
</pallas_src>

<mosaic_0001>
module attributes {stable_mosaic.version = 11 : i64} {
  func.func @_global_avg_pool_kernel(%arg0: i32, %arg1: i32, %arg2: i32, %arg3: memref<2x8x32xf32, #tpu.memory_space<vmem>>, %arg4: memref<2x32xf32, #tpu.memory_space<vmem>>, %arg5: memref<2x32xf32, #tpu.memory_space<vmem>>) attributes {dimension_semantics = [#tpu.dimension_semantics<parallel>, #tpu.dimension_semantics<parallel>, #tpu.dimension_semantics<arbitrary>], iteration_bounds = array<i64: 1, 1, 1>, scalar_prefetch = 0 : i64, scratch_operands = 1 : i64, tpu.core_type = #tpu.core_type<tc>, window_params = [{transform_indices = @transform_0, window_bounds = array<i64: 2, 8, 32>}, {transform_indices = @transform_1, window_bounds = array<i64: 2, 32>}]} {
    %c0_i32 = arith.constant 0 : i32
    %0 = arith.cmpi eq, %arg2, %c0_i32 : i32
    %1 = arith.extui %0 : i1 to i32
    %c0_i32_0 = arith.constant 0 : i32
    %2 = arith.cmpi ne, %1, %c0_i32_0 : i32
    scf.if %2 {
      %cst_9 = arith.constant 0.000000e+00 : f32
      %11 = vector.broadcast %cst_9 : f32 to vector<2x32xf32>
      %c0_10 = arith.constant 0 : index
      %c0_11 = arith.constant 0 : index
      %12 = vector.load %arg5[%c0_10, %c0_11] : memref<2x32xf32, #tpu.memory_space<vmem>>, vector<2x32xf32>
      tpu.vector_store %arg5[%c0_10, %c0_11], %11 {strides = array<i32>} : memref<2x32xf32, #tpu.memory_space<vmem>>, vector<2x32xf32>,
    } else {
    }
    %c0 = arith.constant 0 : index
    %c0_1 = arith.constant 0 : index
    %3 = vector.load %arg5[%c0, %c0_1] : memref<2x32xf32, #tpu.memory_space<vmem>>, vector<2x32xf32>
    %c0_2 = arith.constant 0 : index
    %c0_3 = arith.constant 0 : index
    %c0_4 = arith.constant 0 : index
    %4 = vector.load %arg3[%c0_2, %c0_3, %c0_4] : memref<2x8x32xf32, #tpu.memory_space<vmem>>, vector<2x8x32xf32>
    %cst = arith.constant dense<0.000000e+00> : vector<2x32xf32>
    %5 = vector.multi_reduction <add>, %4, %cst [1] : vector<2x8x32xf32> to vector<2x32xf32>
    %6 = arith.addf %3, %5 : vector<2x32xf32>
    %c0_5 = arith.constant 0 : index
    %c0_6 = arith.constant 0 : index
    %7 = vector.load %arg5[%c0_5, %c0_6] : memref<2x32xf32, #tpu.memory_space<vmem>>, vector<2x32xf32>
    tpu.vector_store %arg5[%c0_5, %c0_6], %6 {strides = array<i32>} : memref<2x32xf32, #tpu.memory_space<vmem>>, vector<2x32xf32>,
    %c0_i32_7 = arith.constant 0 : i32
    %8 = arith.cmpi eq, %arg2, %c0_i32_7 : i32
    %9 = arith.extui %8 : i1 to i32
    %c0_i32_8 = arith.constant 0 : i32
    %10 = arith.cmpi ne, %9, %c0_i32_8 : i32
    scf.if %10 {
      %c0_9 = arith.constant 0 : index
      %c0_10 = arith.constant 0 : index
      %11 = vector.load %arg5[%c0_9, %c0_10] : memref<2x32xf32, #tpu.memory_space<vmem>>, vector<2x32xf32>
      %cst_11 = arith.constant 1.250000e-01 : f32
      %12 = vector.broadcast %cst_11 : f32 to vector<2x32xf32>
      %13 = arith.mulf %11, %12 : vector<2x32xf32>
      %c0_12 = arith.constant 0 : index
      %c0_13 = arith.constant 0 : index
      %14 = vector.load %arg4[%c0_12, %c0_13] : memref<2x32xf32, #tpu.memory_space<vmem>>, vector<2x32xf32>
      tpu.vector_store %arg4[%c0_12, %c0_13], %13 {strides = array<i32>} : memref<2x32xf32, #tpu.memory_space<vmem>>, vector<2x32xf32>,
    } else {
    }
    return
  }
  func.func @transform_0(%arg0: i32, %arg1: i32, %arg2: i32) -> (i32, i32, i32) {
    %c0_i32 = arith.constant 0 : i32
    return %arg0, %arg2, %arg1 : i32, i32, i32
  }
  func.func @transform_1(%arg0: i32, %arg1: i32, %arg2: i32) -> (i32, i32) {
    %c0_i32 = arith.constant 0 : i32
    return %arg0, %arg1 : i32, i32
  }
}

</mosaic_0001>

<bundles_post_ra>
// kernel: tpu_custom_call.1
= control target key start
LH: loop header
LB: loop body
LE: loop exit
PB: predicated region body
PF: predicated region fallthrough
CT: control target
= control target key end

     0   :  { %6 = vsyncpa [#allocation4], 0  ;;  %s149_s0 = inlined_call_operand.hbm [shape: f32[2,8,32], index: 0, kind: input, shape index: {}]   ;;  %s150_s1 = inlined_call_operand.hbm [shape: f32[2,32], index: 1, kind: output, shape index: {}]  }
   0x1   :  { %7 = vsyncpa [#allocation5], 0  ;;  %s125_s6 = smov [#allocation3]  }
   0x2   :  { %s13_s7 = sshll.u32 %s125_s6, 4  ;;  %s14_s7 = int_to_ptr.vmem [resolvable:$true] %s13_s7 }
   0x3   :  { %s89_s8 = scalar_lea.vmem %s14_s7, 256  ;;  %p94_p1 = scmp.lt.s32.totalorder %s14_s7, %s14_s7 }
   0x4   :  { %p90_p0 = scmp.ne.s32.totalorder %s14_s7, %s89_s8  ;;  %p95_p2 = scmp.lt.s32.totalorder %s89_s8, %s89_s8 }
   0x6   :  { %p96_p3 = por %p95_p2, %p94_p1 }
   0x8   :  { %p97_p4 = pnand %p96_p3, %p90_p0 }
   0xa   :  { %100 = shalt.err (!%p97_p4)
}
   0xb   :  { %s126_s9 = smov 128   ;;  %s127_s10 = smov 8  }
   0xc   :  { %19 = dma.hbm_to_vmem [thread:$0]  %s149_s0, 256, %s14_s7, [#allocation4], %s126_s9, %s126_s9, %s127_s10  }
   0xd   :  { %121 = dma.done.wait [#allocation4], 256  }
   0xe   :  { %122 = vsyncadd [#allocation4], 4294967040  ;;  %vm27_vm0 = vcmask 254976   ;;  %v128_v0 = vmov 0.0   ;;  %vm32_vm1 = vcmask 261120   ;;  %v30_v1 = vld [vmem:[#allocation3] sm:$0xff] }
   0xf   :  { %28 = vst.msk [vmem:[#allocation2] sm:$0x3] %vm27_vm0, %v128_v0  ;;  %v31_v2 = vld [vmem:[#allocation3 + $0x8] sm:$0xff]  ;;  %v33_v3 = vsel %vm32_vm1, %v30_v1, 0.0  ;;  %vm49_vm2 = vcmask 1041409   ;;  %s129_s0 = smov [#allocation6]  }
  0x10   :  { %v40_v4 = vsel %vm32_vm1, %v31_v2, 0.0  ;;  %v34_v5 = vrot.slane %v33_v3, 4  ;;  %s67_s13 = sshll.u32 %s129_s0, 4  ;;  %s68_s13 = int_to_ptr.vmem [resolvable:$true] %s67_s13 }
  0x11   :  { %v41_v6 = vrot.slane %v40_v4, 4  ;;  %s101_s14 = scalar_lea.vmem %s68_s13, 32  ;;  %p106_p6 = scmp.lt.s32.totalorder %s68_s13, %s68_s13 }
  0x12   :  { %v35_v7 = vadd.f32 %v34_v5, %v33_v3  ;;  %p102_p5 = scmp.ne.s32.totalorder %s68_s13, %s101_s14  ;;  %p107_p7 = scmp.lt.s32.totalorder %s101_s14, %s101_s14 }
  0x13   :  { %v42_v8 = vadd.f32 %v41_v6, %v40_v4 }
  0x14   :  { %v36_v9 = vrot.slane %v35_v7, 2  ;;  %p108_p8 = por %p107_p7, %p106_p6 }
  0x15   :  { %v43_v10 = vrot.slane %v42_v8, 2 }
  0x16   :  { %v37_v11 = vadd.f32 %v36_v9, %v35_v7  ;;  %v29_v15 = vld [vmem:[#allocation2] sm:$0x3]  ;;  %p109_p9 = pnand %p108_p8, %p102_p5 }
  0x17   :  { %v44_v12 = vadd.f32 %v43_v10, %v42_v8 }
  0x18   :  { %v38_v13 = vrot.slane %v37_v11, 1 }
  0x19   :  { %v45_v14 = vrot.slane %v44_v12, 1 }
  0x1a   :  { %v39_v16 = vadd.f32 %v38_v13, %v37_v11 }
  0x1b   :  { %v46_v17 = vadd.f32 %v45_v14, %v44_v12 }
  0x1d   :  { %v50_v18 = vsel %vm49_vm2, %v46_v17, %v39_v16 }
  0x1e   :  { %v52_v19 = vadd.f32 %v50_v18, %v29_v15 }
  0x20   :  { %54 = vst.msk [vmem:[#allocation2] sm:$0x3] %vm27_vm0, %v52_v19 }
  0x27   :  { %v58_v20 = vld [vmem:[#allocation2] sm:$0x3] }
  0x28   :  { %v59_v21 = vmul.f32 0.125, %v58_v20 }
  0x2a   :  { %60 = vst.msk [vmem:[#allocation6] sm:$0x3] %vm27_vm0, %v59_v21 }
  0x2b   :  { %112 = shalt.err (!%p109_p9)
}
  0x2c   :  { %70 = dma.vmem_to_hbm [thread:$0]  %s68_s13, 32, %s150_s1, [#allocation5]  }
  0x2d   :  { %123 = dma.done.wait [#allocation5], 32  }
  0x2e   :  { %124 = vsyncadd [#allocation5], 4294967264 }
  0x2f   :  { %74 = vsyncpa [#allocation4], 1 }
  0x30   :  { %75 = vsyncpa [#allocation5], 1 }

</bundles_post_ra>
